<compile_context>
chip_gen: v7x
topology: tpu7x:2x2x1
jax: 0.10.0
libtpu: 0.0.40
codegen_flags: <defaults>
</compile_context>

<pallas_src>
import functools

import jax
import jax.numpy as jnp
from jax.experimental import pallas as pl
from jax.experimental.pallas import tpu as pltpu


def _round_up(x, m):
    return (x + m - 1) // m * m


def _pad2(a, rows, cols):
    r, c = a.shape
    if r == rows and c == cols:
        return a
    return jnp.pad(a, ((0, rows - r), (0, cols - c)))


def cvr_mlp_kernel(x_ref,
                   w0_ref, b0_ref,
                   w1_ref, b1_ref,
                   w2_ref, b2_ref,
                   w3_ref, b3_ref,
                   o_ref):
    # x_ref: (tm, F) slab of the fused (num_ins*items) row axis; F is the true
    # feature width (no HBM padding).  Weights/biases are whole-array resident
    # blocks shared across grid steps.
    x = x_ref[...]

    def dense(a, w_ref, b_ref):
        # Cast activations to the weight dtype (bf16 by default -> bf16 MXU
        # passes with f32 accumulation; a no-op on the exact f32 path).
        # Bias add stays f32 on the VPU.
        a = a.astype(w_ref.dtype)
        return jnp.dot(a, w_ref[...], preferred_element_type=jnp.float32) + b_ref[...]

    h = jnp.maximum(dense(x, w0_ref, b0_ref), 0.0)
    h = jnp.maximum(dense(h, w1_ref, b1_ref), 0.0)
    h = jnp.maximum(dense(h, w2_ref, b2_ref), 0.0)
    logits = dense(h, w3_ref, b3_ref)            # (tm, num_targets) — narrow
    o_ref[...] = jax.nn.sigmoid(logits).astype(o_ref.dtype)


@functools.partial(jax.jit, static_argnames=("tm", "compute_dtype"))
def cvr_model_forward(x, params, *, tm=2048, compute_dtype=jnp.bfloat16):
    """x: (num_ins, items, num_features).
    params: w0..w3 of shape (in, out) (nn.Linear weight pre-transposed) and
            b0..b3 of shape (1, out).
    Returns (num_ins, items, num_targets) == the PyTorch module's output list
    stacked along axis 0."""
    num_ins, items, feat = x.shape
    num_targets = params["w3"].shape[1]
    cd = jnp.dtype(compute_dtype)

    # ---- fuse the per-instance Python loop into one M axis (free reshape) ----
    M = num_ins * items
    x2 = x.reshape(M, feat)

    # ---- tile M: big tiles, but always >= 2 grid steps once M >= 16 so both
    #      TensorCores of a v7x chip get work.  No jnp.pad of x: the partial
    #      tail block (if any) is handled by Pallas block clamping. ----
    tm_eff = max(8, min(tm, _round_up(pl.cdiv(M, 2), 8)))
    grid_m = pl.cdiv(M, tm_eff)

    # ---- weights: zero-pad only the *hidden* widths to 128-lane multiples
    #      (internal/VMEM-only, exact); keep the input width (feat) and the
    #      output width (num_targets) unpadded so HBM stays skinny. ----
    d_out = [params[f"w{i}"].shape[1] for i in range(4)]
    widths = [_round_up(d, 128) for d in d_out[:3]] + [num_targets]
    d_in = [feat] + widths[:3]

    ws, bs = [], []
    for li in range(4):
        ws.append(_pad2(params[f"w{li}"], d_in[li], widths[li]).astype(cd))
        bs.append(_pad2(params[f"b{li}"], 1, widths[li]).astype(jnp.float32))

    def const_spec(arr):
        # Whole-array, grid-invariant block: Pallas only re-DMAs on a block
        # index change, so these are fetched once.  (pl.Buffered(1) would also
        # drop the second VMEM buffer; skipped — minor, and buffer_count=1
        # support varies across compiler versions.)
        return pl.BlockSpec(arr.shape, lambda i: (0, 0))

    out = pl.pallas_call(
        cvr_mlp_kernel,
        out_shape=jax.ShapeDtypeStruct((M, num_targets), jnp.float32),
        grid_spec=pltpu.PrefetchScalarGridSpec(
            num_scalar_prefetch=0,
            grid=(grid_m,),
            in_specs=[
                pl.BlockSpec((tm_eff, feat), lambda i: (i, 0)),
                const_spec(ws[0]), const_spec(bs[0]),
                const_spec(ws[1]), const_spec(bs[1]),
                const_spec(ws[2]), const_spec(bs[2]),
                const_spec(ws[3]), const_spec(bs[3]),
            ],
            out_specs=pl.BlockSpec((tm_eff, num_targets), lambda i: (i, 0)),
        ),
        compiler_params=pltpu.CompilerParams(
            # On v7x, pltpu.CORE_PARALLEL on this axis shards grid steps across
            # the two TensorCores; "parallel" is the portable choice here.
            dimension_semantics=("parallel",),
            # Right-sized: per-step need is < 8 MiB at tm=2048; 32 MiB leaves
            # headroom everywhere and stays well under v7x's 64 MiB VMEM.
            vmem_limit_bytes=32 << 20,
        ),
    )(x2, ws[0], bs[0], ws[1], bs[1], ws[2], bs[2], ws[3], bs[3])

    # Output is already (M, num_targets): no slice, just restore the lead axis.
    return out.reshape(num_ins, items, num_targets)


def init_params(key, num_features, num_targets, intermediate_size):
    dims = [
        (num_features, intermediate_size * 4),
        (intermediate_size * 4, intermediate_size * 2),
        (intermediate_size * 2, intermediate_size // 2),
        (intermediate_size // 2, num_targets),
    ]
    params = {}
    for li, (din, dout) in enumerate(dims):
        key, kw, kb = jax.random.split(key, 3)
        bound = 1.0 / jnp.sqrt(din)
        # (in, out) layout == transpose of torch nn.Linear's weight
        params[f"w{li}"] = jax.random.uniform(
            kw, (din, dout), jnp.float32, minval=-bound, maxval=bound)
        params[f"b{li}"] = jax.random.uniform(
            kb, (1, dout), jnp.float32, minval=-bound, maxval=bound)
    return params


def reference_forward(x, params):
    h = x
    for li in range(3):
        h = jnp.maximum(h @ params[f"w{li}"] + params[f"b{li}"], 0.0)
    return jax.nn.sigmoid(h @ params["w3"] + params["b3"])


if __name__ == "__main__":
    num_ins = 2          # length of the input_feat list
    items = 8            # rows per instance
    num_features = 32
    num_targets = 4
    intermediate_size = 32

    key = jax.random.PRNGKey(0)
    key, kx = jax.random.split(key)
    x = jax.random.normal(kx, (num_ins, items, num_features), jnp.float32)
    params = init_params(key, num_features, num_targets, intermediate_size)

    ref = reference_forward(x, params)

    # Exact f32 path — matches the PyTorch module's math.
    out_f32 = jax.block_until_ready(
        cvr_model_forward(x, params, compute_dtype=jnp.float32))
    assert out_f32.shape == (num_ins, items, num_targets)
    assert jnp.allclose(out_f32, ref, atol=1e-5, rtol=1e-5), "f32 path mismatch"

    # Default path: bf16 weights/activations on the MXU, f32 accumulate/bias/
    # sigmoid (recommended default on v6e/v7x; tolerance covers bf16 rounding).
    out = jax.block_until_ready(cvr_model_forward(x, params))
    assert out.shape == (num_ins, items, num_targets)
    assert jnp.allclose(out, ref, atol=2e-2, rtol=2e-2), "bf16 path mismatch"

    print("KERNEL_OK")
</pallas_src>

<mosaic_0001>
module attributes {stable_mosaic.version = 11 : i64} {
  func.func @cvr_mlp_kernel(%arg0: i32, %arg1: memref<8x32xf32, #tpu.memory_space<vmem>>, %arg2: memref<32x128xf32, #tpu.memory_space<vmem>>, %arg3: memref<1x128xf32, #tpu.memory_space<vmem>>, %arg4: memref<128x128xf32, #tpu.memory_space<vmem>>, %arg5: memref<1x128xf32, #tpu.memory_space<vmem>>, %arg6: memref<128x128xf32, #tpu.memory_space<vmem>>, %arg7: memref<1x128xf32, #tpu.memory_space<vmem>>, %arg8: memref<128x4xf32, #tpu.memory_space<vmem>>, %arg9: memref<1x4xf32, #tpu.memory_space<vmem>>, %arg10: memref<8x4xf32, #tpu.memory_space<vmem>>) attributes {dimension_semantics = [#tpu.dimension_semantics<parallel>], iteration_bounds = array<i64: 2>, scalar_prefetch = 0 : i64, scratch_operands = 0 : i64, tpu.core_type = #tpu.core_type<tc>, window_params = [{transform_indices = @transform_0, window_bounds = array<i64: 8, 32>}, {pipeline_mode = #tpu.pipeline_mode<synchronous>, transform_indices = @transform_1, window_bounds = array<i64: 32, 128>}, {pipeline_mode = #tpu.pipeline_mode<synchronous>, transform_indices = @transform_2, window_bounds = array<i64: 1, 128>}, {pipeline_mode = #tpu.pipeline_mode<synchronous>, transform_indices = @transform_3, window_bounds = array<i64: 128, 128>}, {pipeline_mode = #tpu.pipeline_mode<synchronous>, transform_indices = @transform_4, window_bounds = array<i64: 1, 128>}, {pipeline_mode = #tpu.pipeline_mode<synchronous>, transform_indices = @transform_5, window_bounds = array<i64: 128, 128>}, {pipeline_mode = #tpu.pipeline_mode<synchronous>, transform_indices = @transform_6, window_bounds = array<i64: 1, 128>}, {pipeline_mode = #tpu.pipeline_mode<synchronous>, transform_indices = @transform_7, window_bounds = array<i64: 128, 4>}, {pipeline_mode = #tpu.pipeline_mode<synchronous>, transform_indices = @transform_8, window_bounds = array<i64: 1, 4>}, {transform_indices = @transform_9, window_bounds = array<i64: 8, 4>}]} {
    %c0 = arith.constant 0 : index
    %c0_0 = arith.constant 0 : index
    %0 = vector.load %arg1[%c0, %c0_0] : memref<8x32xf32, #tpu.memory_space<vmem>>, vector<8x32xf32>
    %c0_1 = arith.constant 0 : index
    %c0_2 = arith.constant 0 : index
    %1 = vector.load %arg2[%c0_1, %c0_2] : memref<32x128xf32, #tpu.memory_space<vmem>>, vector<32x128xf32>
    %cst = arith.constant dense<0.000000e+00> : vector<8x128xf32>
    %2 = tpu.matmul %0, %1, %cst {dimension_numbers = #tpu.dot_dimension_numbers<[1], [0], [0], [1], [0, 0, 1, 1], [], []>} : vector<8x32xf32>, vector<32x128xf32>, vector<8x128xf32> -> vector<8x128xf32>
    %c0_3 = arith.constant 0 : index
    %c0_4 = arith.constant 0 : index
    %3 = vector.load %arg3[%c0_3, %c0_4] : memref<1x128xf32, #tpu.memory_space<vmem>>, vector<1x128xf32>
    %4 = vector.broadcast %3 : vector<1x128xf32> to vector<8x128xf32>
    %5 = arith.addf %2, %4 : vector<8x128xf32>
    %cst_5 = arith.constant 0.000000e+00 : f32
    %6 = vector.broadcast %cst_5 : f32 to vector<8x128xf32>
    %7 = arith.maximumf %5, %6 : vector<8x128xf32>
    %c0_6 = arith.constant 0 : index
    %c0_7 = arith.constant 0 : index
    %8 = vector.load %arg4[%c0_6, %c0_7] : memref<128x128xf32, #tpu.memory_space<vmem>>, vector<128x128xf32>
    %cst_8 = arith.constant dense<0.000000e+00> : vector<8x128xf32>
    %9 = tpu.matmul %7, %8, %cst_8 {dimension_numbers = #tpu.dot_dimension_numbers<[1], [0], [0], [1], [0, 0, 1, 1], [], []>} : vector<8x128xf32>, vector<128x128xf32>, vector<8x128xf32> -> vector<8x128xf32>
    %c0_9 = arith.constant 0 : index
    %c0_10 = arith.constant 0 : index
    %10 = vector.load %arg5[%c0_9, %c0_10] : memref<1x128xf32, #tpu.memory_space<vmem>>, vector<1x128xf32>
    %11 = vector.broadcast %10 : vector<1x128xf32> to vector<8x128xf32>
    %12 = arith.addf %9, %11 : vector<8x128xf32>
    %cst_11 = arith.constant 0.000000e+00 : f32
    %13 = vector.broadcast %cst_11 : f32 to vector<8x128xf32>
    %14 = arith.maximumf %12, %13 : vector<8x128xf32>
    %c0_12 = arith.constant 0 : index
    %c0_13 = arith.constant 0 : index
    %15 = vector.load %arg6[%c0_12, %c0_13] : memref<128x128xf32, #tpu.memory_space<vmem>>, vector<128x128xf32>
    %cst_14 = arith.constant dense<0.000000e+00> : vector<8x128xf32>
    %16 = tpu.matmul %14, %15, %cst_14 {dimension_numbers = #tpu.dot_dimension_numbers<[1], [0], [0], [1], [0, 0, 1, 1], [], []>} : vector<8x128xf32>, vector<128x128xf32>, vector<8x128xf32> -> vector<8x128xf32>
    %c0_15 = arith.constant 0 : index
    %c0_16 = arith.constant 0 : index
    %17 = vector.load %arg7[%c0_15, %c0_16] : memref<1x128xf32, #tpu.memory_space<vmem>>, vector<1x128xf32>
    %18 = vector.broadcast %17 : vector<1x128xf32> to vector<8x128xf32>
    %19 = arith.addf %16, %18 : vector<8x128xf32>
    %cst_17 = arith.constant 0.000000e+00 : f32
    %20 = vector.broadcast %cst_17 : f32 to vector<8x128xf32>
    %21 = arith.maximumf %19, %20 : vector<8x128xf32>
    %c0_18 = arith.constant 0 : index
    %c0_19 = arith.constant 0 : index
    %22 = vector.load %arg8[%c0_18, %c0_19] : memref<128x4xf32, #tpu.memory_space<vmem>>, vector<128x4xf32>
    %cst_20 = arith.constant dense<0.000000e+00> : vector<8x4xf32>
    %23 = tpu.matmul %21, %22, %cst_20 {dimension_numbers = #tpu.dot_dimension_numbers<[1], [0], [0], [1], [0, 0, 1, 1], [], []>} : vector<8x128xf32>, vector<128x4xf32>, vector<8x4xf32> -> vector<8x4xf32>
    %c0_21 = arith.constant 0 : index
    %c0_22 = arith.constant 0 : index
    %24 = vector.load %arg9[%c0_21, %c0_22] : memref<1x4xf32, #tpu.memory_space<vmem>>, vector<1x4xf32>
    %25 = vector.broadcast %24 : vector<1x4xf32> to vector<8x4xf32>
    %26 = arith.addf %23, %25 : vector<8x4xf32>
    %27 = arith.negf %26 : vector<8x4xf32>
    %28 = math.exp %27 : vector<8x4xf32>
    %cst_23 = arith.constant 1.000000e+00 : f32
    %29 = vector.broadcast %cst_23 : f32 to vector<8x4xf32>
    %30 = arith.addf %29, %28 : vector<8x4xf32>
    %31 = arith.divf %29, %30 : vector<8x4xf32>
    %c0_24 = arith.constant 0 : index
    %c0_25 = arith.constant 0 : index
    %32 = vector.load %arg10[%c0_24, %c0_25] : memref<8x4xf32, #tpu.memory_space<vmem>>, vector<8x4xf32>
    tpu.vector_store %arg10[%c0_24, %c0_25], %31 {strides = array<i32>} : memref<8x4xf32, #tpu.memory_space<vmem>>, vector<8x4xf32>,
    return
  }
  func.func @transform_0(%arg0: i32) -> (i32, i32) {
    %c0_i32 = arith.constant 0 : i32
    %c0_i32_0 = arith.constant 0 : i32
    return %arg0, %c0_i32 : i32, i32
  }
  func.func @transform_1(%arg0: i32) -> (i32, i32) {
    %c0_i32 = arith.constant 0 : i32
    %c0_i32_0 = arith.constant 0 : i32
    %c0_i32_1 = arith.constant 0 : i32
    return %c0_i32, %c0_i32_0 : i32, i32
  }
  func.func @transform_2(%arg0: i32) -> (i32, i32) {
    %c0_i32 = arith.constant 0 : i32
    %c0_i32_0 = arith.constant 0 : i32
    %c0_i32_1 = arith.constant 0 : i32
    return %c0_i32, %c0_i32_0 : i32, i32
  }
  func.func @transform_3(%arg0: i32) -> (i32, i32) {
    %c0_i32 = arith.constant 0 : i32
    %c0_i32_0 = arith.constant 0 : i32
    %c0_i32_1 = arith.constant 0 : i32
    return %c0_i32, %c0_i32_0 : i32, i32
  }
  func.func @transform_4(%arg0: i32) -> (i32, i32) {
    %c0_i32 = arith.constant 0 : i32
    %c0_i32_0 = arith.constant 0 : i32
    %c0_i32_1 = arith.constant 0 : i32
    return %c0_i32, %c0_i32_0 : i32, i32
  }
  func.func @transform_5(%arg0: i32) -> (i32, i32) {
    %c0_i32 = arith.constant 0 : i32
    %c0_i32_0 = arith.constant 0 : i32
    %c0_i32_1 = arith.constant 0 : i32
    return %c0_i32, %c0_i32_0 : i32, i32
  }
  func.func @transform_6(%arg0: i32) -> (i32, i32) {
    %c0_i32 = arith.constant 0 : i32
    %c0_i32_0 = arith.constant 0 : i32
    %c0_i32_1 = arith.constant 0 : i32
    return %c0_i32, %c0_i32_0 : i32, i32
  }
  func.func @transform_7(%arg0: i32) -> (i32, i32) {
    %c0_i32 = arith.constant 0 : i32
    %c0_i32_0 = arith.constant 0 : i32
    %c0_i32_1 = arith.constant 0 : i32
    return %c0_i32, %c0_i32_0 : i32, i32
  }
  func.func @transform_8(%arg0: i32) -> (i32, i32) {
    %c0_i32 = arith.constant 0 : i32
    %c0_i32_0 = arith.constant 0 : i32
    %c0_i32_1 = arith.constant 0 : i32
    return %c0_i32, %c0_i32_0 : i32, i32
  }
  func.func @transform_9(%arg0: i32) -> (i32, i32) {
    %c0_i32 = arith.constant 0 : i32
    %c0_i32_0 = arith.constant 0 : i32
    return %arg0, %c0_i32 : i32, i32
  }
}

</mosaic_0001>

<bundles_post_ra>
// kernel: cvr_model_forward.1
= control target key start
LH: loop header
LB: loop body
LE: loop exit
PB: predicated region body
PF: predicated region fallthrough
CT: control target
= control target key end

     0   :  { %s1098_s30 = smov 0   ;;  %s1324_s0 = inlined_call_operand.vmem [shape: f32[16,32], index: 0, kind: input, shape index: {}]   ;;  %s1325_s1 = inlined_call_operand.vmem [shape: f32[32,128], index: 1, kind: input, shape index: {}]   ;;  %s1326_s2 = inlined_call_operand.vmem [shape: f32[1,128], index: 2, kind: input, shape index: {}]   ;;  %s1327_s3 = inlined_call_operand.vmem [shape: f32[128,128], index: 3, kind: input, shape index: {}]   ;;  %s1328_s4 = inlined_call_operand.vmem [shape: f32[1,128], index: 4, kind: input, shape index: {}]   ;;  %s1329_s5 = inlined_call_operand.vmem [shape: f32[128,128], index: 5, kind: input, shape index: {}]   ;;  %s1330_s6 = inlined_call_operand.vmem [shape: f32[1,128], index: 6, kind: input, shape index: {}]   ;;  %s1331_s7 = inlined_call_operand.vmem [shape: f32[128,4], index: 7, kind: input, shape index: {}]   ;;  %s1332_s8 = inlined_call_operand.vmem [shape: f32[1,4], index: 8, kind: input, shape index: {}]   ;;  %s1333_s9 = inlined_call_operand.vmem [shape: f32[16,4], index: 9, kind: output, shape index: {}]  }
   0x1 LB: > { %s757_s10 = sadd.s32 4294967295, %s1043_s30   ;;  %p761_p0 = scmp.ge.s32.totalorder %s1043_s30, 1  ;;  %s1043_s30 = sphi %s1098_s30, %s19_s30  }
   0x2   : > { %p286_p1 = scmp.lt.s32.totalorder %s1043_s30, 3 }
   0x4   : > { %p287_p2 = pnand %p761_p0, %p286_p1 }
   0x5   : > { %v329_v0 = vld [vmem:[%s1325_s1] sm:$0xff] (!%p287_p2)  ;;  %v330_v1 = vld [vmem:[%s1325_s1 + $0x8] sm:$0xff] (!%p287_p2)  ;;  %v331_v2 = vld [vmem:[%s1325_s1 + $0x10] sm:$0xff] (!%p287_p2)  ;;  %v1045_v3 = vmov (!%p287_p2), 0.0|0.0   ;;  %vm1046_vm0 = vmmov (!%p287_p2), 0   ;;  %v1047_v6 = vmov (!%p287_p2), 0.0  }
   0x6   : > { %290 = sbr.rel (%p287_p2) target bundleno = 906 (0x38a), region = 56  ;;  %944 = vmatprep.subr.bf16.mxu0 (!%p287_p2), %v1045_v3  ;;  %v945_v4 = vpack.c.bf16 (!%p287_p2), %v330_v1, %v329_v0  ;;  %v332_v5 = vld [vmem:[%s1325_s1 + $0x18] sm:$0xff] (!%p287_p2)  ;;  %836 = vmatprep.mubr.msk.f32.mxu0 (!%p287_p2), %vm1046_vm0, %v1047_v6  ;;  %p320_p3 = scmp.lt.s32.totalorder (!%p287_p2), %s757_s10, 1  ;;  %v415_v7 = vld [vmem:[%s1327_s3] sm:$0xff] (!%p287_p2)  ;;  %v416_v8 = vld [vmem:[%s1327_s3 + $0x8] sm:$0xff] (!%p287_p2)  ;;  %vm340_vm1 = vcmask (!%p287_p2), 261120  }
   0x7   : > { %950 = vmatprep.subr.bf16.mxu1 (!%p287_p2), %v1045_v3  ;;  %v951_v9 = vpack.c.bf16 (!%p287_p2), %v416_v8, %v415_v7  ;;  %v417_v10 = vld [vmem:[%s1327_s3 + $0x10] sm:$0xff] (!%p287_p2)  ;;  %v418_v11 = vld [vmem:[%s1327_s3 + $0x18] sm:$0xff] (!%p287_p2)  ;;  %871 = vmatprep.mubr.msk.f32.mxu1 (!%p287_p2), %vm1046_vm0, %v1047_v6  ;;  %v948_v12 = vpack.c.bf16 (!%p287_p2), %v332_v5, %v331_v2  ;;  %v419_v14 = vld [vmem:[%s1327_s3 + $0x20] sm:$0xff] (!%p287_p2)  ;;  %vm702_vm2 = vcmask (!%p287_p2), 31744  }
   0x8   : > { %946 = vmatpush3.bf16.msra.mxu0 (!%p287_p2), %v945_v4  ;;  %v954_v13 = vpack.c.bf16 (!%p287_p2), %v418_v11, %v417_v10  ;;  %v420_v15 = vld [vmem:[%s1327_s3 + $0x28] sm:$0xff] (!%p287_p2)  ;;  %v421_v18 = vld [vmem:[%s1327_s3 + $0x30] sm:$0xff] (!%p287_p2)  ;;  %v422_v19 = vld [vmem:[%s1327_s3 + $0x38] sm:$0xff] (!%p287_p2) }
   0x9   : > { %947 = vmatprep.subr.bf16.mxu0 (!%p287_p2), %v1045_v3  ;;  %952 = vmatpush3.bf16.msra.mxu1 (!%p287_p2), %v951_v9  ;;  %v957_v17 = vpack.c.bf16 (!%p287_p2), %v420_v15, %v419_v14  ;;  %v960_v20 = vpack.c.bf16 (!%p287_p2), %v422_v19, %v421_v18  ;;  %v423_v21 = vld [vmem:[%s1327_s3 + $0x40] sm:$0xff] (!%p287_p2)  ;;  %v424_v22 = vld [vmem:[%s1327_s3 + $0x48] sm:$0xff] (!%p287_p2)  ;;  %v425_v24 = vld [vmem:[%s1327_s3 + $0x50] sm:$0xff] (!%p287_p2) }
   0xa   : > { %953 = vmatprep.subr.bf16.mxu1 (!%p287_p2), %v1045_v3  ;;  %v963_v23 = vpack.c.bf16 (!%p287_p2), %v424_v22, %v423_v21  ;;  %v426_v25 = vld [vmem:[%s1327_s3 + $0x58] sm:$0xff] (!%p287_p2)  ;;  %v427_v27 = vld [vmem:[%s1327_s3 + $0x60] sm:$0xff] (!%p287_p2)  ;;  %v428_v28 = vld [vmem:[%s1327_s3 + $0x68] sm:$0xff] (!%p287_p2) }
   0xb   : > { %v966_v26 = vpack.c.bf16 (!%p287_p2), %v426_v25, %v425_v24  ;;  %v969_v29 = vpack.c.bf16 (!%p287_p2), %v428_v28, %v427_v27  ;;  %v429_v30 = vld [vmem:[%s1327_s3 + $0x70] sm:$0xff] (!%p287_p2)  ;;  %v430_v31 = vld [vmem:[%s1327_s3 + $0x78] sm:$0xff] (!%p287_p2)  ;;  %v509_v33 = vld [vmem:[%s1329_s5] sm:$0xff] (!%p287_p2) }
   0xc   : > { %949 = vmatpush3.bf16.msra.mxu0 (!%p287_p2), %v948_v12  ;;  %v972_v32 = vpack.c.bf16 (!%p287_p2), %v430_v31, %v429_v30  ;;  %v510_v34 = vld [vmem:[%s1329_s5 + $0x8] sm:$0xff] (!%p287_p2)  ;;  %v511_v35 = vld [vmem:[%s1329_s5 + $0x10] sm:$0xff] (!%p287_p2)  ;;  %v512_v37 = vld [vmem:[%s1329_s5 + $0x18] sm:$0xff] (!%p287_p2) }
   0xd   : > { %s1335_s10 = smov (!%p320_p3, %s757_s10), 1  ;;  %955 = vmatpush3.bf16.msra.mxu1 %v954_v13  ;;  %974 = vmatprep.subr.bf16.mxu0 %v1045_v3  ;;  %v975_v36 = vpack.c.bf16 %v510_v34, %v509_v33  ;;  %v978_v38 = vpack.c.bf16 %v512_v37, %v511_v35  ;;  %v513_v39 = vld [vmem:[%s1329_s5 + $0x20] sm:$0xff]  ;;  %v514_v40 = vld [vmem:[%s1329_s5 + $0x28] sm:$0xff]  ;;  %v515_v42 = vld [vmem:[%s1329_s5 + $0x30] sm:$0xff] }
   0xe   : > { %s762_s27 = sshll.u32 %s1335_s10, 3  ;;  %956 = vmatprep.subr.bf16.mxu1 %v1045_v3  ;;  %v981_v41 = vpack.c.bf16 %v514_v40, %v513_v39  ;;  %v516_v43 = vld [vmem:[%s1329_s5 + $0x38] sm:$0xff]  ;;  %v517_v45 = vld [vmem:[%s1329_s5 + $0x40] sm:$0xff]  ;;  %v518_v46 = vld [vmem:[%s1329_s5 + $0x48] sm:$0xff] }
   0xf   : > { %s323_s15 = scalar_lea.vmem %s1324_s0, %s762_s27  ;;  %v984_v44 = vpack.c.bf16 %v516_v43, %v515_v42  ;;  %v987_v47 = vpack.c.bf16 %v518_v46, %v517_v45  ;;  %v519_v48 = vld [vmem:[%s1329_s5 + $0x50] sm:$0xff]  ;;  %v520_v49 = vld [vmem:[%s1329_s5 + $0x58] sm:$0xff]  ;;  %v521_v51 = vld [vmem:[%s1329_s5 + $0x60] sm:$0xff]  ;;  %s327_s20 = scalar_lea.vmem %s1333_s9, %s762_s27 }
  0x10   : > { %v328_v16 = vld [vmem:[%s323_s15] sm:$0xff]  ;;  %v990_v50 = vpack.c.bf16 %v520_v49, %v519_v48  ;;  %v522_v52 = vld [vmem:[%s1329_s5 + $0x68] sm:$0xff]  ;;  %v523_v59 = vld [vmem:[%s1329_s5 + $0x70] sm:$0xff] }
  0x11   : > { %837 = vmatmul.mubr.msk.f32.vlgmr.msra.gmra.mrb[0].mxu0 %vm340_vm1, %v328_v16  ;;  %958 = vmatpush3.bf16.msra.mxu1 %v957_v17  ;;  %v993_v53 = vpack.c.bf16 %v522_v52, %v521_v51  ;;  %v764_v54 = vld [vmem:[%s1326_s2] ss:$0 sm:$0xff]  ;;  %v524_v60 = vld [vmem:[%s1329_s5 + $0x78] sm:$0xff]  ;;  %v604_v63 = vld [vmem:[%s1331_s7 + $0x8] sm:$0xff] }
  0x12   : > { %906 = vmatprep.mubr.msk.f32.mxu0 %vm1046_vm0, %v1047_v6  ;;  %959 = vmatprep.subr.bf16.mxu1 %v1045_v3  ;;  %v996_v61 = vpack.c.bf16 %v524_v60, %v523_v59  ;;  %v603_v62 = vld [vmem:[%s1331_s7] sm:$0xff]  ;;  %v605_v0 = vld [vmem:[%s1331_s7 + $0x10] sm:$0xff]  ;;  %v606_v2 = vld [vmem:[%s1331_s7 + $0x18] sm:$0xff] }
  0x13   : > { %976 = vmatpush3.bf16.msra.mxu0 %v975_v36  ;;  %v999_v1 = vpack.c.bf16 %v604_v63, %v603_v62  ;;  %v1002_v4 = vpack.c.bf16 %v606_v2, %v605_v0  ;;  %v607_v5 = vld [vmem:[%s1331_s7 + $0x20] sm:$0xff]  ;;  %v609_v8 = vld [vmem:[%s1331_s7 + $0x30] sm:$0xff]  ;;  %v610_v9 = vld [vmem:[%s1331_s7 + $0x38] sm:$0xff] }
  0x14   : > { %977 = vmatprep.subr.bf16.mxu0 %v1045_v3  ;;  %v1008_v10 = vpack.c.bf16 %v610_v9, %v609_v8  ;;  %v611_v11 = vld [vmem:[%s1331_s7 + $0x40] sm:$0xff]  ;;  %v612_v12 = vld [vmem:[%s1331_s7 + $0x48] sm:$0xff]  ;;  %v613_v14 = vld [vmem:[%s1331_s7 + $0x50] sm:$0xff] }
  0x15   : > { %961 = vmatpush3.bf16.msra.mxu1 %v960_v20  ;;  %v1011_v13 = vpack.c.bf16 %v612_v12, %v611_v11  ;;  %v614_v15 = vld [vmem:[%s1331_s7 + $0x58] sm:$0xff]  ;;  %v615_v17 = vld [vmem:[%s1331_s7 + $0x60] sm:$0xff]  ;;  %v616_v18 = vld [vmem:[%s1331_s7 + $0x68] sm:$0xff] }
  0x16   : > { %962 = vmatprep.subr.bf16.mxu1 %v1045_v3  ;;  %v1014_v16 = vpack.c.bf16 %v614_v15, %v613_v14  ;;  %v1017_v19 = vpack.c.bf16 %v616_v18, %v615_v17  ;;  %v766_v20 = vld [vmem:[%s1328_s4] ss:$0 sm:$0xff]  ;;  %v617_v25 = vld [vmem:[%s1331_s7 + $0x70] sm:$0xff] }
  0x17   : > { %979 = vmatpush3.bf16.msra.mxu0 %v978_v38 }
  0x18   : > { %980 = vmatprep.subr.bf16.mxu0 %v1045_v3 }
  0x19   : > { %964 = vmatpush3.bf16.msra.mxu1 %v963_v23 }
  0x1a   : > { %965 = vmatprep.subr.bf16.mxu1 %v1045_v3 }
  0x1b   : > { %982 = vmatpush3.bf16.msra.mxu0 %v981_v41 }
  0x1c   : > { %983 = vmatprep.subr.bf16.mxu0 %v1045_v3 }
  0x1d   : > { %967 = vmatpush3.bf16.msra.mxu1 %v966_v26  ;;  %v618_v26 = vld [vmem:[%s1331_s7 + $0x78] sm:$0xff] }
  0x1e   : > { %968 = vmatprep.subr.bf16.mxu1 %v1045_v3  ;;  %v1020_v27 = vpack.c.bf16 %v618_v26, %v617_v25 }
  0x1f   : > { %985 = vmatpush3.bf16.msra.mxu0 %v984_v44 }
  0x20   : > { %986 = vmatprep.subr.bf16.mxu0 %v1045_v3 }
  0x21   : > { %970 = vmatpush3.bf16.msra.mxu1 %v969_v29 }
  0x22   : > { %971 = vmatprep.subr.bf16.mxu1 %v1045_v3 }
  0x23   : > { %988 = vmatpush3.bf16.msra.mxu0 %v987_v47 }
  0x24   : > { %989 = vmatprep.subr.bf16.mxu0 %v1045_v3 }
  0x25   : > { %973 = vmatpush3.bf16.msra.mxu1 %v972_v32  ;;  %v768_v32 = vld [vmem:[%s1332_s8] ss:$0 sm:$0xff] }
  0x26   : > { %998 = vmatprep.subr.bf16.mxu1 %v1045_v3 }
  0x27   : > { %991 = vmatpush3.bf16.msra.mxu0 %v990_v50 }
  0x28   : > { %992 = vmatprep.subr.bf16.mxu0 %v1045_v3 }
  0x2b   : > { %994 = vmatpush3.bf16.msra.mxu0 %v993_v53 }
  0x2c   : > { %995 = vmatprep.subr.bf16.mxu0 %v1045_v3 }
  0x2f   : > { %997 = vmatpush3.bf16.msra.mxu0 %v996_v61 }
  0xe4   : > { %v410_v55 = vpop.f32.mrb[0].mxu0 }
  0xe5   : > { %v411_v56 = vadd.f32 %v764_v54, %v410_v55  ;;  %v838_v57 = vpop.f32.mrb[1].mxu0 }
  0xe7   : > { %v414_v58 = vmax.f32 %v411_v56, 0.0 }
  0xe9   : > { %872 = vmatmul.mubr.f32.vlgmr.msra.gmra.mrb[0].mxu1 %v414_v58 }
  0xea   : > { %941 = vmatprep.mubr.msk.f32.mxu1 %vm1046_vm0, %v1047_v6  ;;  %1000 = vmatpush3.bf16.msra.mxu1 %v999_v1  ;;  %v608_v6 = vld [vmem:[%s1331_s7 + $0x28] sm:$0xff] }
  0xeb   : > { %1001 = vmatprep.subr.bf16.mxu1 %v1045_v3  ;;  %v1005_v7 = vpack.c.bf16 %v608_v6, %v607_v5 }
  0xee   : > { %1003 = vmatpush3.bf16.msra.mxu1 %v1002_v4 }
  0xef   : > { %1004 = vmatprep.subr.bf16.mxu1 %v1045_v3 }
  0xf2   : > { %1006 = vmatpush3.bf16.msra.mxu1 %v1005_v7 }
  0xf3   : > { %1007 = vmatprep.subr.bf16.mxu1 %v1045_v3 }
  0xf6   : > { %1009 = vmatpush3.bf16.msra.mxu1 %v1008_v10 }
  0xf7   : > { %1010 = vmatprep.subr.bf16.mxu1 %v1045_v3 }
  0xfa   : > { %1012 = vmatpush3.bf16.msra.mxu1 %v1011_v13 }
  0xfb   : > { %1013 = vmatprep.subr.bf16.mxu1 %v1045_v3 }
  0xfe   : > { %1015 = vmatpush3.bf16.msra.mxu1 %v1014_v16 }
  0xff   : > { %1016 = vmatprep.subr.bf16.mxu1 %v1045_v3 }
 0x102   : > { %1018 = vmatpush3.bf16.msra.mxu1 %v1017_v19 }
 0x103   : > { %1019 = vmatprep.subr.bf16.mxu1 %v1045_v3  ;;  %v767_v3 = vld [vmem:[%s1330_s6] ss:$0 sm:$0xff] }
 0x106   : > { %1021 = vmatpush3.bf16.msra.mxu1 %v1020_v27 }
 0x1bc   : > { %v504_v21 = vpop.f32.mrb[0].mxu1 }
 0x1bd   : > { %v505_v22 = vadd.f32 %v766_v20, %v504_v21  ;;  %v873_v23 = vpop.f32.mrb[1].mxu1 }
 0x1bf   : > { %v508_v24 = vmax.f32 %v505_v22, 0.0 }
 0x1c1   : > { %907 = vmatmul.mubr.f32.vlgmr.msra.gmra.mrb[2].mxu0 %v508_v24 }
 0x294   : > { %v598_v28 = vpop.f32.mrb[2].mxu0 }
 0x295   : > { %v599_v29 = vadd.f32 %v767_v3, %v598_v28  ;;  %v908_v30 = vpop.f32.mrb[3].mxu0 }
 0x297   : > { %v602_v31 = vmax.f32 %v599_v29, 0.0 }
 0x299   : > { %942 = vmatmul.mubr.f32.vlgmr.msra.gmra.mrb[2].mxu1 %v602_v31 }
 0x36c   : > { %v692_v33 = vpop.f32.mrb[2].mxu1 }
 0x36d   : > { %v693_v34 = vadd.f32 %v768_v32, %v692_v33  ;;  %v943_v35 = vpop.f32.mrb[3].mxu1 }
 0x36f   : > { %v769_v36 = vmul.f32 -1.442695, %v693_v34 }
 0x371   : > { %1033 = vpow2.f32 %v769_v36 }
 0x37b   : > { %v1034_v37 = vpop.eup %1033 }
 0x37c   : > { %v699_v38 = vadd.f32 1.0, %v1034_v37 }
 0x37e   : > { %1035 = vrcp.f32 %v699_v38 }
 0x388   : > { %v1036_v39 = vpop.eup %1035 }
 0x389   : > { %703 = vst.msk [vmem:[%s327_s20] sm:$0xff] %vm702_vm2, %v1036_v39 }
 0x38a PF: > { %s19_s30 = sadd.s32 1, %s1043_s30  }
 0x38b   : > { %p16_p4 = scmp.ge.s32.totalorder %s19_s30, 4  }
 0x38d   :  { %18 = sbr.rel (!%p16_p4) target bundleno = 1 (0x1), region = 86 }

</bundles_post_ra>
